<compile_context>
chip_gen: v5e
topology: v5e:2x2
jax: 0.10.0
libtpu: 0.0.40
codegen_flags: <defaults>
</compile_context>

<pallas_src>
import jax
import jax.numpy as jnp
import numpy as np
from jax.experimental import pallas as pl
from jax.experimental.pallas import tpu as pltpu

NEG_SLOPE = 0.01       # torch.nn.functional.leaky_relu default
N_HIDDEN = 2048        # fc1 / data_linear output width
N_MID = 1024           # data_middle output width
TN = 512               # hidden-dim tile streamed per grid step
NB = N_HIDDEN // TN    # 4 weight blocks
KFC = 64 * 128         # 8192 : fc1 input width
KD = 64 * 25           # 1600 : data_linear input width


def _leaky(x):
    return jnp.where(x > 0, x, NEG_SLOPE * x)


# ----------------------------------------------------------------------------
# Kernel 1: fused 1x1-conv stack  (conv1 -> lrelu -> conv2 -> lrelu)
# A 1x1 conv over NCHW is a per-pixel matmul, so the whole stack is two small
# matmuls over the (B*H*W, Cin) pixel matrix.  Output emitted as bf16 features.
# ----------------------------------------------------------------------------
def conv1x1_kernel(x_ref, w1_ref, b1_ref, w2_ref, b2_ref, o_ref):
    h = jnp.dot(x_ref[...], w1_ref[...], preferred_element_type=jnp.float32) + b1_ref[...]
    h = _leaky(h)
    h = jnp.dot(h, w2_ref[...], preferred_element_type=jnp.float32) + b2_ref[...]
    o_ref[...] = _leaky(h).astype(o_ref.dtype)


def conv1x1_stack(x_pix, w1, b1, w2, b2):
    n_pix = x_pix.shape[0]
    cout = w2.shape[1]
    vmem = pl.BlockSpec(memory_space=pltpu.MemorySpace.VMEM)
    return pl.pallas_call(
        conv1x1_kernel,
        out_shape=jax.ShapeDtypeStruct((n_pix, cout), jnp.bfloat16),
        in_specs=[vmem, vmem, vmem, vmem, vmem],
        out_specs=vmem,
    )(x_pix, w1, b1, w2, b2)


# ----------------------------------------------------------------------------
# Kernel 2: fused FC head + epilogue.
# Grid = (NB,), single "arbitrary" reduction axis over tn-wide hidden blocks.
# Per step: stream int8 fc1 / data_linear / data_middle weight slabs, dequant
# to bf16 (cast + per-column scale after the f32-accumulated dot), combine
# (leaky + leaky + add), and accumulate the data_middle partial product into
# a resident (B, 1024) f32 scratch.  On the last step: bias + leaky + the
# data_final row-reduce (VPU/XLU, no degenerate N=1 matmul) -> (B, 1).
# ----------------------------------------------------------------------------
def fc_head_kernel(xfc_ref, xflat_ref, wfc_ref, fcsb_ref, wd_ref, dlsb_ref,
                   wm_ref, midsb_ref, wf_ref, bf_ref, o_ref, acc_ref):
    k = pl.program_id(0)

    @pl.when(k == 0)
    def _init():
        acc_ref[...] = jnp.zeros_like(acc_ref)

    fcsb = fcsb_ref[k]          # (2, TN): row 0 = int8 col scale, row 1 = bias
    dlsb = dlsb_ref[k]

    # fc1 tile: (B, 8192) @ (8192, TN), int8 weights dequantized on the fly.
    x_t = jnp.dot(xfc_ref[...], wfc_ref[...].astype(jnp.bfloat16),
                  preferred_element_type=jnp.float32)
    x_t = _leaky(x_t * fcsb[0:1, :] + fcsb[1:2, :])

    # data_linear tile: (B, 1600) @ (1600, TN)
    h_t = jnp.dot(xflat_ref[...], wd_ref[...].astype(jnp.bfloat16),
                  preferred_element_type=jnp.float32)
    h_t = _leaky(h_t * dlsb[0:1, :] + dlsb[1:2, :]) + x_t

    # data_middle partial product, accumulated unscaled (scale is per output
    # column only, so it can be applied once to the final sum).
    acc_ref[...] += jnp.dot(h_t.astype(jnp.bfloat16),
                            wm_ref[...].astype(jnp.bfloat16),
                            preferred_element_type=jnp.float32)

    @pl.when(k == pl.num_programs(0) - 1)
    def _finalize():
        mid = _leaky(acc_ref[...] * midsb_ref[0:1, :] + midsb_ref[1:2, :])
        o_ref[...] = (jnp.sum(mid * wf_ref[...], axis=-1, keepdims=True)
                      + bf_ref[...])


def fc_head(x_fc, x_flat, p):
    B = x_fc.shape[0]
    return pl.pallas_call(
        fc_head_kernel,
        out_shape=jax.ShapeDtypeStruct((B, 1), jnp.float32),
        grid_spec=pltpu.PrefetchScalarGridSpec(
            num_scalar_prefetch=0,
            grid=(NB,),
            in_specs=[
                # small resident activations (bf16), constant index map
                pl.BlockSpec((B, KFC), lambda k: (0, 0)),
                pl.BlockSpec((B, KD), lambda k: (0, 0)),
                # fc1 weight block: contiguous (KFC, TN) int8 slab per step
                pl.BlockSpec((None, KFC, TN), lambda k: (k, 0, 0)),
                # fc1 scale/bias: resident (NB, 2, TN) f32, sliced in-kernel
                pl.BlockSpec((NB, 2, TN), lambda k: (0, 0, 0)),
                # data_linear weight block: contiguous (KD, TN) int8 slab
                pl.BlockSpec((None, KD, TN), lambda k: (k, 0, 0)),
                pl.BlockSpec((NB, 2, TN), lambda k: (0, 0, 0)),
                # data_middle weight block: contiguous (TN, N_MID) int8 slab
                pl.BlockSpec((None, TN, N_MID), lambda k: (k, 0, 0)),
                # data_middle scale / bias, data_final weight row & bias: resident
                pl.BlockSpec((2, N_MID), lambda k: (0, 0)),
                pl.BlockSpec((1, N_MID), lambda k: (0, 0)),
                pl.BlockSpec((1, 1), lambda k: (0, 0)),
            ],
            out_specs=pl.BlockSpec((B, 1), lambda k: (0, 0)),
            scratch_shapes=[pltpu.VMEM((B, N_MID), jnp.float32)],
        ),
        compiler_params=pltpu.CompilerParams(
            dimension_semantics=("arbitrary",),
            vmem_limit_bytes=48 * 1024 * 1024,   # ~22 MiB needed; fits v7x 64 MiB
        ),
    )(x_fc, x_flat, p["wfc1_blk"], p["fc1_sb"], p["wd_blk"], p["dl_sb"],
      p["wm_blk"], p["mid_sb"], p["wf_row"], p["bf"])


# ----------------------------------------------------------------------------
# Full forward (wrapper glue: layout reshapes only; weight prep is in params)
# ----------------------------------------------------------------------------
def chess_conv_net_forward(x0, p):
    if x0.ndim == 3:                       # mirror the PyTorch x0.view(1,-1,8,8) path
        x0 = x0.reshape(1, -1, 8, 8)
    B = x0.shape[0]
    # NCHW -> pixel-major (B*H*W, Cin) for the 1x1-conv kernel.
    x_pix = jnp.transpose(x0, (0, 2, 3, 1)).reshape(B * 64, 25)
    conv_out = conv1x1_stack(x_pix, p["w1"], p["b1"], p["w2"], p["b2"])  # (B*64,128) bf16
    # Per-batch flatten of conv features in (hw, c) order (fc1 weights permuted to match).
    x_fc = conv_out.reshape(B, KFC)
    # torch.flatten(x0, 1): (B, C*H*W) in (c, hw) order.
    x_flat = x0.reshape(B, KD).astype(jnp.bfloat16)
    return fc_head(x_fc, x_flat, p)


# ----------------------------------------------------------------------------
# Parameter prep: f32 masters (reference) + int8 pre-blocked streaming copies
# with per-output-column f32 scales, plus pure-JAX f32 reference forward.
# ----------------------------------------------------------------------------
def _quant_cols(w):
    """Symmetric per-output-column int8 quantization of a (K, N) matrix."""
    amax = jnp.max(jnp.abs(w), axis=0)
    scale = jnp.maximum(amax, 1e-8) / 127.0
    q = jnp.clip(jnp.round(w / scale), -127, 127).astype(jnp.int8)
    return q, scale.astype(jnp.float32)


def init_params(key):
    ks = jax.random.split(key, 12)

    def lin(k, fan_in, fan_out):
        return (jax.random.normal(k, (fan_in, fan_out), jnp.float32)
                / jnp.sqrt(jnp.float32(fan_in)))

    def bias(k, n):
        return 0.01 * jax.random.normal(k, (1, n), jnp.float32)

    p = {}
    p["w1"] = lin(ks[0], 25, 128)          # conv1 as (Cin, Cout)
    p["b1"] = bias(ks[1], 128)
    p["w2"] = lin(ks[2], 128, 128)         # conv2 as (Cin, Cout)
    p["b2"] = bias(ks[3], 128)
    # fc1 weight stored with rows in PyTorch flatten order (c*64 + hw).
    p["wfc1"] = lin(ks[4], KFC, N_HIDDEN)
    p["bfc1"] = bias(ks[5], N_HIDDEN)
    p["wd"] = lin(ks[6], KD, N_HIDDEN)
    p["bd"] = bias(ks[7], N_HIDDEN)
    p["wm"] = lin(ks[8], N_HIDDEN, N_MID)
    p["bm"] = bias(ks[9], N_MID)
    p["wf"] = lin(ks[10], N_MID, 1)
    p["bf"] = bias(ks[11], 1)

    # --- kernel streaming copies: int8 + per-column scales, tile-contiguous ---
    # fc1: permute rows to (hw*128 + c) order to match the kernel's feature layout.
    wfc1p = (p["wfc1"].reshape(128, 64, N_HIDDEN)
             .transpose(1, 0, 2).reshape(KFC, N_HIDDEN))
    qfc, sfc = _quant_cols(wfc1p)
    p["wfc1_blk"] = qfc.reshape(KFC, NB, TN).transpose(1, 0, 2)          # (NB,KFC,TN) i8
    p["fc1_sb"] = jnp.stack([sfc.reshape(NB, TN),
                             p["bfc1"].reshape(NB, TN)], axis=1)         # (NB,2,TN) f32

    qd, sd = _quant_cols(p["wd"])
    p["wd_blk"] = qd.reshape(KD, NB, TN).transpose(1, 0, 2)              # (NB,KD,TN) i8
    p["dl_sb"] = jnp.stack([sd.reshape(NB, TN),
                            p["bd"].reshape(NB, TN)], axis=1)            # (NB,2,TN) f32

    qm, sm = _quant_cols(p["wm"])
    p["wm_blk"] = qm.reshape(NB, TN, N_MID)                              # (NB,TN,NMID) i8
    p["mid_sb"] = jnp.concatenate([sm[None, :], p["bm"]], axis=0)        # (2,NMID) f32

    p["wf_row"] = jnp.transpose(p["wf"])                                 # (1,NMID) f32
    return p


def reference_forward(x0, p):
    """Pure-JAX f32 mirror of the PyTorch forward (NCHW conventions)."""
    B = x0.shape[0]
    x_pix = jnp.transpose(x0, (0, 2, 3, 1)).reshape(B * 64, 25)
    c1 = _leaky(x_pix @ p["w1"] + p["b1"])
    c2 = _leaky(c1 @ p["w2"] + p["b2"])                     # (B*64, 128)
    # PyTorch flatten of the NCHW conv output: (c, hw) order.
    c2_torch = (c2.reshape(B, 8, 8, 128).transpose(0, 3, 1, 2).reshape(B, KFC))
    x = _leaky(c2_torch @ p["wfc1"] + p["bfc1"])
    h = _leaky(x0.reshape(B, KD) @ p["wd"] + p["bd"]) + x
    h = _leaky(h @ p["wm"] + p["bm"])
    return h @ p["wf"] + p["bf"]


if __name__ == "__main__":
    key = jax.random.PRNGKey(0)
    k_x, k_p = jax.random.split(key)

    B = 2
    x0 = jax.random.normal(k_x, (B, 25, 8, 8), jnp.float32)  # NCHW, 13+12=25 planes
    params = init_params(k_p)

    out = chess_conv_net_forward(x0, params)
    out = jax.block_until_ready(out)

    ref = reference_forward(x0, params)
    # Tolerance widened slightly vs the pure-bf16 version: the kernel streams
    # int8 weights (per-column scales) + bf16 activations against an f32 ref.
    np.testing.assert_allclose(np.asarray(out), np.asarray(ref), rtol=6e-2, atol=8e-2)

    print("KERNEL_OK")
</pallas_src>

<mosaic_0001>
module attributes {stable_mosaic.version = 11 : i64} {
  func.func @conv1x1_kernel(%arg0: memref<128x25xf32, #tpu.memory_space<vmem>>, %arg1: memref<25x128xf32, #tpu.memory_space<vmem>>, %arg2: memref<1x128xf32, #tpu.memory_space<vmem>>, %arg3: memref<128x128xf32, #tpu.memory_space<vmem>>, %arg4: memref<1x128xf32, #tpu.memory_space<vmem>>, %arg5: memref<128x128xbf16, #tpu.memory_space<vmem>>) attributes {dimension_semantics = [], scalar_prefetch = 0 : i64, scratch_operands = 0 : i64, tpu.core_type = #tpu.core_type<tc>} {
    %c0 = arith.constant 0 : index
    %c0_0 = arith.constant 0 : index
    %0 = vector.load %arg0[%c0, %c0_0] : memref<128x25xf32, #tpu.memory_space<vmem>>, vector<128x25xf32>
    %c0_1 = arith.constant 0 : index
    %c0_2 = arith.constant 0 : index
    %1 = vector.load %arg1[%c0_1, %c0_2] : memref<25x128xf32, #tpu.memory_space<vmem>>, vector<25x128xf32>
    %cst = arith.constant dense<0.000000e+00> : vector<128x128xf32>
    %2 = tpu.matmul %0, %1, %cst {dimension_numbers = #tpu.dot_dimension_numbers<[1], [0], [0], [1], [0, 0, 1, 1], [], []>} : vector<128x25xf32>, vector<25x128xf32>, vector<128x128xf32> -> vector<128x128xf32>
    %c0_3 = arith.constant 0 : index
    %c0_4 = arith.constant 0 : index
    %3 = vector.load %arg2[%c0_3, %c0_4] : memref<1x128xf32, #tpu.memory_space<vmem>>, vector<1x128xf32>
    %4 = vector.broadcast %3 : vector<1x128xf32> to vector<128x128xf32>
    %5 = arith.addf %2, %4 : vector<128x128xf32>
    %cst_5 = arith.constant 0.000000e+00 : f32
    %6 = vector.broadcast %cst_5 : f32 to vector<128x128xf32>
    %7 = arith.cmpf ogt, %5, %6 : vector<128x128xf32>
    %cst_6 = arith.constant 0.00999999977 : f32
    %8 = vector.broadcast %cst_6 : f32 to vector<128x128xf32>
    %9 = arith.mulf %8, %5 : vector<128x128xf32>
    %10 = arith.select %7, %5, %9 : vector<128x128xi1>, vector<128x128xf32>
    %c0_7 = arith.constant 0 : index
    %c0_8 = arith.constant 0 : index
    %11 = vector.load %arg3[%c0_7, %c0_8] : memref<128x128xf32, #tpu.memory_space<vmem>>, vector<128x128xf32>
    %cst_9 = arith.constant dense<0.000000e+00> : vector<128x128xf32>
    %12 = tpu.matmul %10, %11, %cst_9 {dimension_numbers = #tpu.dot_dimension_numbers<[1], [0], [0], [1], [0, 0, 1, 1], [], []>} : vector<128x128xf32>, vector<128x128xf32>, vector<128x128xf32> -> vector<128x128xf32>
    %c0_10 = arith.constant 0 : index
    %c0_11 = arith.constant 0 : index
    %13 = vector.load %arg4[%c0_10, %c0_11] : memref<1x128xf32, #tpu.memory_space<vmem>>, vector<1x128xf32>
    %14 = vector.broadcast %13 : vector<1x128xf32> to vector<128x128xf32>
    %15 = arith.addf %12, %14 : vector<128x128xf32>
    %cst_12 = arith.constant 0.000000e+00 : f32
    %16 = vector.broadcast %cst_12 : f32 to vector<128x128xf32>
    %17 = arith.cmpf ogt, %15, %16 : vector<128x128xf32>
    %cst_13 = arith.constant 0.00999999977 : f32
    %18 = vector.broadcast %cst_13 : f32 to vector<128x128xf32>
    %19 = arith.mulf %18, %15 : vector<128x128xf32>
    %20 = arith.select %17, %15, %19 : vector<128x128xi1>, vector<128x128xf32>
    %21 = arith.truncf %20 : vector<128x128xf32> to vector<128x128xbf16>
    %c0_14 = arith.constant 0 : index
    %c0_15 = arith.constant 0 : index
    %22 = vector.load %arg5[%c0_14, %c0_15] : memref<128x128xbf16, #tpu.memory_space<vmem>>, vector<128x128xbf16>
    tpu.vector_store %arg5[%c0_14, %c0_15], %21 {strides = array<i32>} : memref<128x128xbf16, #tpu.memory_space<vmem>>, vector<128x128xbf16>,
    return
  }
}

</mosaic_0001>

<bundles_post_ra>
// kernel: tpu_custom_call.1
= control target key start
LH: loop header
LB: loop body
LE: loop exit
PB: predicated region body
PF: predicated region fallthrough
CT: control target
= control target key end

     0   :  { %vm94_vm0 = vcmask 1040384   ;;  %s727_s0 = inlined_call_operand.vmem [shape: f32[128,25], index: 0, kind: input, shape index: {}]   ;;  %s728_s1 = inlined_call_operand.vmem [shape: f32[25,128], index: 1, kind: input, shape index: {}]   ;;  %s729_s2 = inlined_call_operand.vmem [shape: f32[1,128], index: 2, kind: input, shape index: {}]   ;;  %s730_s3 = inlined_call_operand.vmem [shape: f32[128,128], index: 3, kind: input, shape index: {}]   ;;  %s731_s4 = inlined_call_operand.vmem [shape: f32[1,128], index: 4, kind: input, shape index: {}]   ;;  %s732_s5 = inlined_call_operand.hbm [shape: bf16[128,128], index: 5, kind: output, shape index: {}]  }
   0x1   :  { %v40_v0 = vld [vmem:[%s728_s1 + $0x18] sm:$0x1]  ;;  %v39_v1 = vld [vmem:[%s728_s1 + $0x10] sm:$0xff]  ;;  %v38_v2 = vld [vmem:[%s728_s1 + $0x8] sm:$0xff] }
   0x2   :  { %394 = vmatpush.msk.msra.mxu0 %vm94_vm0, %v40_v0  ;;  %458 = vmatpush.msk.msra.mxu3 %vm94_vm0, %v40_v0 }
   0x4   :  { %111 = vmatpush.msra.mxu0 %v39_v1  ;;  %459 = vmatpush.msra.mxu3 %v39_v1 }
   0x5   :  { %10 = vsyncpa [#allocation3], 0  ;;  %v37_v3 = vld [vmem:[%s728_s1] sm:$0xff]  ;;  %vm45_vm1 = vcmask 203776   ;;  %v22_v5 = vld [vmem:[%s727_s0 + $0x8] sm:$0xff]  ;;  %s382_s16 = sshll.u32 %s732_s5, 4  ;;  %s383_s16 = int_to_ptr.hbm [resolvable:$true] %s382_s16 }
   0x6   :  { %112 = vmatpush.msra.mxu0 %v38_v2  ;;  %v21_v4 = vld [vmem:[%s727_s0] sm:$0xff]  ;;  %460 = vmatpush.msra.mxu3 %v38_v2  ;;  %v31_v6 = vld [vmem:[%s727_s0 + $0x50] sm:$0xff]  ;;  %v32_v8 = vld [vmem:[%s727_s0 + $0x58] sm:$0xff]  ;;  %s526_s17 = smov 64   ;;  %s527_s18 = smov 4  }
   0x7   :  { %v23_v7 = vld [vmem:[%s727_s0 + $0x10] sm:$0xff]  ;;  %v24_v9 = vld [vmem:[%s727_s0 + $0x18] sm:$0xff]  ;;  %v33_v10 = vld [vmem:[%s727_s0 + $0x60] sm:$0xff] }
   0x8   :  { %113 = vmatpush.msra.mxu0 %v37_v3  ;;  %461 = vmatpush.msra.mxu3 %v37_v3  ;;  %v25_v11 = vld [vmem:[%s727_s0 + $0x20] sm:$0xff]  ;;  %v34_v12 = vld [vmem:[%s727_s0 + $0x68] sm:$0xff]  ;;  %v35_v14 = vld [vmem:[%s727_s0 + $0x70] sm:$0xff] }
   0x9   :  { %395 = vmatmul.msk.f32.vlgmr.msra.gmra.mxu0 %vm45_vm1, %v21_v4  ;;  %405 = vmatmul.msk.f32.vlgmr.msra.gmra.mxu3 %vm45_vm1, %v31_v6  ;;  %v26_v13 = vld [vmem:[%s727_s0 + $0x28] sm:$0xff]  ;;  %v226_v15 = vld [vmem:[%s730_s3 + $0x78] sm:$0xff]  ;;  %v225_v16 = vld [vmem:[%s730_s3 + $0x70] sm:$0xff] }
   0xa   :  { %231 = vmatpush.msra.mxu1 %v226_v15  ;;  %v224_v17 = vld [vmem:[%s730_s3 + $0x68] sm:$0xff]  ;;  %462 = vmatpush.msra.mxu2 %v226_v15  ;;  %v223_v18 = vld [vmem:[%s730_s3 + $0x60] sm:$0xff]  ;;  %v27_v19 = vld [vmem:[%s727_s0 + $0x30] sm:$0xff] }
   0xb   :  { %463 = vmatpush.msrb.mxu3 %v226_v15  ;;  %v36_v20 = vld [vmem:[%s727_s0 + $0x78] sm:$0xff]  ;;  %v221_v22 = vld [vmem:[%s730_s3 + $0x50] sm:$0xff]  ;;  %v220_v23 = vld [vmem:[%s730_s3 + $0x48] sm:$0xff] }
   0xc   :  { %232 = vmatpush.msra.mxu1 %v225_v16  ;;  %464 = vmatpush.msra.mxu2 %v225_v16  ;;  %v222_v21 = vld [vmem:[%s730_s3 + $0x58] sm:$0xff]  ;;  %v219_v24 = vld [vmem:[%s730_s3 + $0x40] sm:$0xff]  ;;  %v217_v27 = vld [vmem:[%s730_s3 + $0x30] sm:$0xff] }
   0xd   :  { %465 = vmatpush.msrb.mxu3 %v225_v16  ;;  %v28_v25 = vld [vmem:[%s727_s0 + $0x38] sm:$0xff]  ;;  %v216_v28 = vld [vmem:[%s730_s3 + $0x28] sm:$0xff]  ;;  %v215_v29 = vld [vmem:[%s730_s3 + $0x20] sm:$0xff] }
   0xe   :  { %233 = vmatpush.msra.mxu1 %v224_v17  ;;  %466 = vmatpush.msra.mxu2 %v224_v17  ;;  %v218_v26 = vld [vmem:[%s730_s3 + $0x38] sm:$0xff]  ;;  %v29_v30 = vld [vmem:[%s727_s0 + $0x40] sm:$0xff]  ;;  %v30_v32 = vld [vmem:[%s727_s0 + $0x48] sm:$0xff] }
   0xf   :  { %467 = vmatpush.msrb.mxu3 %v224_v17  ;;  %v214_v31 = vld [vmem:[%s730_s3 + $0x18] sm:$0xff]  ;;  %v213_v33 = vld [vmem:[%s730_s3 + $0x10] sm:$0xff]  ;;  %v212_v34 = vld [vmem:[%s730_s3 + $0x8] sm:$0xff] }
  0x10   :  { %234 = vmatpush.msra.mxu1 %v223_v18  ;;  %468 = vmatpush.msra.mxu2 %v223_v18  ;;  %v211_v35 = vld [vmem:[%s730_s3] sm:$0xff] }
  0x11   :  { %396 = vmatmul.msk.f32.gmra.mxu0 %vm45_vm1, %v22_v5  ;;  %406 = vmatmul.msk.f32.gmra.mxu3 %vm45_vm1, %v32_v8  ;;  %v685_v36 = vld [vmem:[%s729_s2] ss:$0 sm:$0xff] }
  0x12   :  { %235 = vmatpush.msra.mxu1 %v222_v21  ;;  %470 = vmatpush.msra.mxu2 %v222_v21 }
  0x13   :  { %469 = vmatpush.msrb.mxu3 %v223_v18 }
  0x14   :  { %236 = vmatpush.msra.mxu1 %v221_v22  ;;  %472 = vmatpush.msra.mxu2 %v221_v22 }
  0x15   :  { %471 = vmatpush.msrb.mxu3 %v222_v21 }
  0x16   :  { %237 = vmatpush.msra.mxu1 %v220_v23  ;;  %474 = vmatpush.msra.mxu2 %v220_v23 }
  0x17   :  { %473 = vmatpush.msrb.mxu3 %v221_v22 }
  0x18   :  { %238 = vmatpush.msra.mxu1 %v219_v24  ;;  %476 = vmatpush.msra.mxu2 %v219_v24 }
  0x19   :  { %397 = vmatmul.msk.f32.gmra.mxu0 %vm45_vm1, %v23_v7  ;;  %407 = vmatmul.msk.f32.gmra.mxu3 %vm45_vm1, %v33_v10 }
  0x1a   :  { %239 = vmatpush.msra.mxu1 %v218_v26  ;;  %475 = vmatpush.msrb.mxu3 %v220_v23 }
  0x1b   :  { %478 = vmatpush.msra.mxu2 %v218_v26 }
  0x1c   :  { %240 = vmatpush.msra.mxu1 %v217_v27  ;;  %477 = vmatpush.msrb.mxu3 %v219_v24 }
  0x1d   :  { %480 = vmatpush.msra.mxu2 %v217_v27 }
  0x1e   :  { %241 = vmatpush.msra.mxu1 %v216_v28  ;;  %479 = vmatpush.msrb.mxu3 %v218_v26 }
  0x1f   :  { %482 = vmatpush.msra.mxu2 %v216_v28 }
  0x20   :  { %242 = vmatpush.msra.mxu1 %v215_v29  ;;  %481 = vmatpush.msrb.mxu3 %v217_v27 }
  0x21   :  { %398 = vmatmul.msk.f32.gmra.mxu0 %vm45_vm1, %v24_v9  ;;  %408 = vmatmul.msk.f32.gmra.mxu3 %vm45_vm1, %v34_v12 }
  0x22   :  { %484 = vmatpush.msra.mxu2 %v215_v29  ;;  %243 = vmatpush.msra.mxu1 %v214_v31 }
  0x23   :  { %483 = vmatpush.msrb.mxu3 %v216_v28 }
  0x24   :  { %486 = vmatpush.msra.mxu2 %v214_v31  ;;  %244 = vmatpush.msra.mxu1 %v213_v33 }
  0x25   :  { %485 = vmatpush.msrb.mxu3 %v215_v29 }
  0x26   :  { %488 = vmatpush.msra.mxu2 %v213_v33  ;;  %245 = vmatpush.msra.mxu1 %v212_v34 }
  0x27   :  { %487 = vmatpush.msrb.mxu3 %v214_v31 }
  0x28   :  { %490 = vmatpush.msra.mxu2 %v212_v34  ;;  %246 = vmatpush.msra.mxu1 %v211_v35 }
  0x29   :  { %399 = vmatmul.msk.f32.gmra.mxu0 %vm45_vm1, %v25_v11  ;;  %409 = vmatmul.msk.f32.gmra.mxu3 %vm45_vm1, %v35_v14 }
  0x2a   :  { %489 = vmatpush.msrb.mxu3 %v213_v33  ;;  %492 = vmatpush.msra.mxu2 %v211_v35 }
  0x2c   :  { %491 = vmatpush.msrb.mxu3 %v212_v34 }
  0x2e   :  { %493 = vmatpush.msrb.mxu3 %v211_v35 }
  0x31   :  { %400 = vmatmul.msk.f32.gmra.mxu0 %vm45_vm1, %v26_v13  ;;  %410 = vmatmul.msk.f32.gmra.mxu3 %vm45_vm1, %v36_v20 }
  0x39   :  { %401 = vmatmul.msk.f32.gmra.mxu0 %vm45_vm1, %v27_v19 }
  0x41   :  { %402 = vmatmul.msk.f32.gmra.mxu0 %vm45_vm1, %v28_v25 }
  0x49   :  { %403 = vmatmul.msk.f32.gmra.mxu0 %vm45_vm1, %v29_v30 }
  0x51   :  { %404 = vmatmul.msk.f32.gmra.mxu0 %vm45_vm1, %v30_v32 }
  0x86   :  { %v115_v37 = vpop.f32.mrf.mxu0 }
  0x87   :  { %v116_v38 = vadd.f32 %v685_v36, %v115_v37 }
  0x89   :  { %vm163_vm2 = vcmp.gt.f32.partialorder %v116_v38, 0.0  ;;  %v179_v39 = vmul.f32 0.01, %v116_v38 }
  0x8b   :  { %v195_v40 = vsel %vm163_vm2, %v116_v38, %v179_v39  ;;  %v706_v39 = vld [vmem:[%s731_s4] ss:$0 sm:$0xff]  ;;  %s525_s4 = smov [#allocation2]  }
  0x8c   :  { %247 = vmatmul.f32.vlgmr.msra.gmra.mxu1 %v195_v40  ;;  %v145_v47 = vpop.f32.mrf.mxu3  ;;  %s380_s13 = sshll.u32 %s525_s4, 4  ;;  %s381_s13 = int_to_ptr.vmem [resolvable:$true] %s380_s13 }
  0x8d   :  { %v146_v24 = vadd.f32 %v685_v36, %v145_v47 }
  0x8e   :  { %v118_v41 = vpop.f32.mrf.mxu0 }
  0x8f   :  { %v119_v42 = vadd.f32 %v685_v36, %v118_v41  ;;  %v189_v26 = vmul.f32 0.01, %v146_v24  ;;  %vm173_vm14 = vcmp.gt.f32.partialorder %v146_v24, 0.0 }
  0x91   :  { %vm164_vm3 = vcmp.gt.f32.partialorder %v119_v42, 0.0  ;;  %v180_v43 = vmul.f32 0.01, %v119_v42  ;;  %v205_v28 = vsel %vm173_vm14, %v146_v24, %v189_v26 }
  0x93   :  { %v196_v44 = vsel %vm164_vm3, %v119_v42, %v180_v43 }
  0x94   :  { %250 = vmatmul.f32.gmra.mxu1 %v196_v44  ;;  %v148_v52 = vpop.f32.mrf.mxu3 }
  0x95   :  { %v149_v27 = vadd.f32 %v685_v36, %v148_v52 }
  0x96   :  { %v121_v45 = vpop.f32.mrf.mxu0 }
  0x97   :  { %v122_v46 = vadd.f32 %v685_v36, %v121_v45  ;;  %v190_v29 = vmul.f32 0.01, %v149_v27  ;;  %vm174_vm15 = vcmp.gt.f32.partialorder %v149_v27, 0.0 }
  0x99   :  { %vm165_vm4 = vcmp.gt.f32.partialorder %v122_v46, 0.0  ;;  %v181_v48 = vmul.f32 0.01, %v122_v46  ;;  %v206_v31 = vsel %vm174_vm15, %v149_v27, %v190_v29 }
  0x9b   :  { %v197_v49 = vsel %vm165_vm4, %v122_v46, %v181_v48 }
  0x9c   :  { %253 = vmatmul.f32.gmra.mxu1 %v197_v49  ;;  %v151_v57 = vpop.f32.mrf.mxu3 }
  0x9d   :  { %v152_v30 = vadd.f32 %v685_v36, %v151_v57 }
  0x9e   :  { %v124_v50 = vpop.f32.mrf.mxu0 }
  0x9f   :  { %v125_v51 = vadd.f32 %v685_v36, %v124_v50  ;;  %v191_v32 = vmul.f32 0.01, %v152_v30  ;;  %vm175_vm0 = vcmp.gt.f32.partialorder %v152_v30, 0.0 }
  0xa1   :  { %vm166_vm5 = vcmp.gt.f32.partialorder %v125_v51, 0.0  ;;  %v182_v53 = vmul.f32 0.01, %v125_v51  ;;  %v207_v34 = vsel %vm175_vm0, %v152_v30, %v191_v32 }
  0xa3   :  { %v198_v54 = vsel %vm166_vm5, %v125_v51, %v182_v53 }
  0xa4   :  { %256 = vmatmul.f32.gmra.mxu1 %v198_v54  ;;  %v154_v62 = vpop.f32.mrf.mxu3 }
  0xa5   :  { %v155_v33 = vadd.f32 %v685_v36, %v154_v62 }
  0xa6   :  { %v127_v55 = vpop.f32.mrf.mxu0 }
  0xa7   :  { %v128_v56 = vadd.f32 %v685_v36, %v127_v55  ;;  %v192_v35 = vmul.f32 0.01, %v155_v33  ;;  %vm176_vm1 = vcmp.gt.f32.partialorder %v155_v33, 0.0 }
  0xa9   :  { %vm167_vm6 = vcmp.gt.f32.partialorder %v128_v56, 0.0  ;;  %v183_v58 = vmul.f32 0.01, %v128_v56  ;;  %v208_v37 = vsel %vm176_vm1, %v155_v33, %v192_v35 }
  0xab   :  { %v199_v59 = vsel %vm167_vm6, %v128_v56, %v183_v58 }
  0xac   :  { %259 = vmatmul.f32.gmra.mxu1 %v199_v59  ;;  %v157_v3 = vpop.f32.mrf.mxu3 }
  0xad   :  { %v158_v4 = vadd.f32 %v685_v36, %v157_v3 }
  0xae   :  { %v130_v60 = vpop.f32.mrf.mxu0 }
  0xaf   :  { %v131_v61 = vadd.f32 %v685_v36, %v130_v60  ;;  %v193_v6 = vmul.f32 0.01, %v158_v4  ;;  %vm177_vm9 = vcmp.gt.f32.partialorder %v158_v4, 0.0 }
  0xb1   :  { %vm168_vm7 = vcmp.gt.f32.partialorder %v131_v61, 0.0  ;;  %v184_v63 = vmul.f32 0.01, %v131_v61  ;;  %v209_v8 = vsel %vm177_vm9, %v158_v4, %v193_v6 }
  0xb2   :  { %289 = vmatmul.f32.vlgmr.msrb.gmra.mxu3 %v209_v8 }
  0xb3   :  { %v200_v0 = vsel %vm168_vm7, %v131_v61, %v184_v63 }
  0xb4   :  { %262 = vmatmul.f32.gmra.mxu1 %v200_v0  ;;  %v160_v11 = vpop.f32.mrf.mxu3 }
  0xb5   :  { %v161_v12 = vadd.f32 %v685_v36, %v160_v11 }
  0xb6   :  { %v133_v1 = vpop.f32.mrf.mxu0 }
  0xb7   :  { %v134_v2 = vadd.f32 %v685_v36, %v133_v1  ;;  %vm178_vm11 = vcmp.gt.f32.partialorder %v161_v12, 0.0  ;;  %v194_v15 = vmul.f32 0.01, %v161_v12 }
  0xb9   :  { %vm169_vm8 = vcmp.gt.f32.partialorder %v134_v2, 0.0  ;;  %v185_v5 = vmul.f32 0.01, %v134_v2  ;;  %v210_v17 = vsel %vm178_vm11, %v161_v12, %v194_v15 }
  0xba   :  { %292 = vmatmul.f32.gmra.mxu3 %v210_v17 }
  0xbb   :  { %v201_v7 = vsel %vm169_vm8, %v134_v2, %v185_v5 }
  0xbc   :  { %265 = vmatmul.f32.gmra.mxu1 %v201_v7 }
  0xbe   :  { %v136_v9 = vpop.f32.mrf.mxu0 }
  0xbf   :  { %v137_v10 = vadd.f32 %v685_v36, %v136_v9 }
  0xc1   :  { %vm170_vm10 = vcmp.gt.f32.partialorder %v137_v10, 0.0  ;;  %v186_v13 = vmul.f32 0.01, %v137_v10 }
  0xc3   :  { %v202_v14 = vsel %vm170_vm10, %v137_v10, %v186_v13 }
  0xc4   :  { %268 = vmatmul.f32.vlgmr.msra.gmra.mxu2 %v202_v14 }
  0xc6   :  { %v139_v16 = vpop.f32.mrf.mxu0 }
  0xc7   :  { %v140_v18 = vadd.f32 %v685_v36, %v139_v16 }
  0xc9   :  { %vm171_vm12 = vcmp.gt.f32.partialorder %v140_v18, 0.0  ;;  %v187_v19 = vmul.f32 0.01, %v140_v18 }
  0xcb   :  { %v203_v20 = vsel %vm171_vm12, %v140_v18, %v187_v19 }
  0xcc   :  { %271 = vmatmul.f32.gmra.mxu2 %v203_v20 }
  0xce   :  { %v142_v21 = vpop.f32.mrf.mxu0 }
  0xcf   :  { %v143_v22 = vadd.f32 %v685_v36, %v142_v21 }
  0xd1   :  { %vm172_vm13 = vcmp.gt.f32.partialorder %v143_v22, 0.0  ;;  %v188_v23 = vmul.f32 0.01, %v143_v22 }
  0xd3   :  { %v204_v25 = vsel %vm172_vm13, %v143_v22, %v188_v23 }
  0xd4   :  { %274 = vmatmul.f32.gmra.mxu2 %v204_v25 }
  0xdc   :  { %277 = vmatmul.f32.gmra.mxu2 %v205_v28 }
  0xe4   :  { %280 = vmatmul.f32.gmra.mxu2 %v206_v31 }
  0xec   :  { %283 = vmatmul.f32.gmra.mxu2 %v207_v34 }
  0xf4   :  { %286 = vmatmul.f32.gmra.mxu2 %v208_v37 }
 0x109   :  { %v248_v38 = vpop.f32.mrf.mxu1 }
 0x10a   :  { %v249_v40 = vadd.f32 %v706_v39, %v248_v38 }
 0x10c   :  { %v312_v42 = vmul.f32 0.01, %v249_v40  ;;  %vm296_vm2 = vcmp.gt.f32.partialorder %v249_v40, 0.0 }
 0x10e   :  { %v328_v44 = vsel %vm296_vm2, %v249_v40, %v312_v42 }
 0x111   :  { %v251_v41 = vpop.f32.mrf.mxu1 }
 0x112   :  { %v252_v43 = vadd.f32 %v706_v39, %v251_v41 }
 0x114   :  { %vm297_vm3 = vcmp.gt.f32.partialorder %v252_v43, 0.0  ;;  %v313_v36 = vmul.f32 0.01, %v252_v43 }
 0x116   :  { %v329_v45 = vsel %vm297_vm3, %v252_v43, %v313_v36 }
 0x117   :  { %v414_v46 = vpack.c.bf16 %v329_v45, %v328_v44 }
 0x119   :  { %415 = vst [vmem:[#allocation2] sm:$0xff] %v414_v46   ;;  %v254_v47 = vpop.f32.mrf.mxu1 }
 0x11a   :  { %v255_v48 = vadd.f32 %v706_v39, %v254_v47 }
 0x11c   :  { %v314_v50 = vmul.f32 0.01, %v255_v48  ;;  %vm298_vm4 = vcmp.gt.f32.partialorder %v255_v48, 0.0 }
 0x11e   :  { %v330_v53 = vsel %vm298_vm4, %v255_v48, %v314_v50 }
 0x121   :  { %v257_v49 = vpop.f32.mrf.mxu1 }
 0x122   :  { %v258_v51 = vadd.f32 %v706_v39, %v257_v49 }
 0x124   :  { %vm299_vm5 = vcmp.gt.f32.partialorder %v258_v51, 0.0  ;;  %v315_v52 = vmul.f32 0.01, %v258_v51 }
 0x126   :  { %v331_v54 = vsel %vm299_vm5, %v258_v51, %v315_v52 }
 0x127   :  { %v419_v55 = vpack.c.bf16 %v331_v54, %v330_v53 }
 0x129   :  { %451 = vst [vmem:[#allocation2 + $0x8] sm:$0xff] %v419_v55   ;;  %v260_v56 = vpop.f32.mrf.mxu1 }
 0x12a   :  { %v261_v57 = vadd.f32 %v706_v39, %v260_v56 }
 0x12c   :  { %v316_v59 = vmul.f32 0.01, %v261_v57  ;;  %vm300_vm6 = vcmp.gt.f32.partialorder %v261_v57, 0.0 }
 0x12e   :  { %v332_v62 = vsel %vm300_vm6, %v261_v57, %v316_v59 }
 0x131   :  { %v263_v58 = vpop.f32.mrf.mxu1 }
 0x132   :  { %v264_v60 = vadd.f32 %v706_v39, %v263_v58 }
 0x134   :  { %vm301_vm7 = vcmp.gt.f32.partialorder %v264_v60, 0.0  ;;  %v317_v61 = vmul.f32 0.01, %v264_v60 }
 0x135   :  { %v290_v2 = vpop.f32.mrf.mxu3 }
 0x136   :  { %v333_v63 = vsel %vm301_vm7, %v264_v60, %v317_v61  ;;  %v291_v4 = vadd.f32 %v706_v39, %v290_v2 }
 0x137   :  { %v424_v0 = vpack.c.bf16 %v333_v63, %v332_v62 }
 0x138   :  { %v326_v9 = vmul.f32 0.01, %v291_v4  ;;  %vm310_vm10 = vcmp.gt.f32.partialorder %v291_v4, 0.0 }
 0x139   :  { %452 = vst [vmem:[#allocation2 + $0x10] sm:$0xff] %v424_v0   ;;  %v266_v1 = vpop.f32.mrf.mxu1 }
 0x13a   :  { %v267_v3 = vadd.f32 %v706_v39, %v266_v1  ;;  %v342_v15 = vsel %vm310_vm10, %v291_v4, %v326_v9 }
 0x13c   :  { %v318_v6 = vmul.f32 0.01, %v267_v3  ;;  %vm302_vm8 = vcmp.gt.f32.partialorder %v267_v3, 0.0 }
 0x13d   :  { %v293_v10 = vpop.f32.mrf.mxu3 }
 0x13e   :  { %v334_v11 = vsel %vm302_vm8, %v267_v3, %v318_v6  ;;  %v294_v13 = vadd.f32 %v706_v39, %v293_v10 }
 0x140   :  { %v327_v16 = vmul.f32 0.01, %v294_v13  ;;  %vm311_vm11 = vcmp.gt.f32.partialorder %v294_v13, 0.0 }
 0x142   :  { %v343_v18 = vsel %vm311_vm11, %v294_v13, %v327_v16 }
 0x143   :  { %v449_v19 = vpack.c.bf16 %v343_v18, %v342_v15 }
 0x145   :  { %457 = vst [vmem:[#allocation2 + $0x38] sm:$0xff] %v449_v19  }
 0x147   :  { %v269_v5 = vpop.f32.mrf.mxu2 }
 0x148   :  { %v270_v7 = vadd.f32 %v706_v39, %v269_v5 }
 0x14a   :  { %vm303_vm9 = vcmp.gt.f32.partialorder %v270_v7, 0.0  ;;  %v319_v8 = vmul.f32 0.01, %v270_v7 }
 0x14c   :  { %v335_v12 = vsel %vm303_vm9, %v270_v7, %v319_v8 }
 0x14d   :  { %v429_v14 = vpack.c.bf16 %v335_v12, %v334_v11 }
 0x14f   :  { %453 = vst [vmem:[#allocation2 + $0x18] sm:$0xff] %v429_v14   ;;  %v272_v17 = vpop.f32.mrf.mxu2 }
 0x150   :  { %v273_v20 = vadd.f32 %v706_v39, %v272_v17 }
 0x152   :  { %v320_v22 = vmul.f32 0.01, %v273_v20  ;;  %vm304_vm12 = vcmp.gt.f32.partialorder %v273_v20, 0.0 }
 0x154   :  { %v336_v25 = vsel %vm304_vm12, %v273_v20, %v320_v22 }
 0x157   :  { %v275_v21 = vpop.f32.mrf.mxu2 }
 0x158   :  { %v276_v23 = vadd.f32 %v706_v39, %v275_v21 }
 0x15a   :  { %vm305_vm13 = vcmp.gt.f32.partialorder %v276_v23, 0.0  ;;  %v321_v24 = vmul.f32 0.01, %v276_v23 }
 0x15c   :  { %v337_v26 = vsel %vm305_vm13, %v276_v23, %v321_v24 }
 0x15d   :  { %v434_v27 = vpack.c.bf16 %v337_v26, %v336_v25 }
 0x15f   :  { %454 = vst [vmem:[#allocation2 + $0x20] sm:$0xff] %v434_v27   ;;  %v278_v28 = vpop.f32.mrf.mxu2 }
 0x160   :  { %v279_v29 = vadd.f32 %v706_v39, %v278_v28 }
 0x162   :  { %v322_v31 = vmul.f32 0.01, %v279_v29  ;;  %vm306_vm14 = vcmp.gt.f32.partialorder %v279_v29, 0.0 }
 0x164   :  { %v338_v34 = vsel %vm306_vm14, %v279_v29, %v322_v31 }
 0x167   :  { %v281_v30 = vpop.f32.mrf.mxu2 }
 0x168   :  { %v282_v32 = vadd.f32 %v706_v39, %v281_v30 }
 0x16a   :  { %vm307_vm15 = vcmp.gt.f32.partialorder %v282_v32, 0.0  ;;  %v323_v33 = vmul.f32 0.01, %v282_v32 }
 0x16c   :  { %v339_v35 = vsel %vm307_vm15, %v282_v32, %v323_v33 }
 0x16d   :  { %v439_v37 = vpack.c.bf16 %v339_v35, %v338_v34 }
 0x16f   :  { %455 = vst [vmem:[#allocation2 + $0x28] sm:$0xff] %v439_v37   ;;  %v284_v38 = vpop.f32.mrf.mxu2 }
 0x170   :  { %v285_v40 = vadd.f32 %v706_v39, %v284_v38 }
 0x172   :  { %v324_v42 = vmul.f32 0.01, %v285_v40  ;;  %vm308_vm0 = vcmp.gt.f32.partialorder %v285_v40, 0.0 }
 0x174   :  { %v340_v44 = vsel %vm308_vm0, %v285_v40, %v324_v42 }
 0x177   :  { %v287_v41 = vpop.f32.mrf.mxu2 }
 0x178   :  { %v288_v43 = vadd.f32 %v706_v39, %v287_v41 }
 0x17a   :  { %vm309_vm1 = vcmp.gt.f32.partialorder %v288_v43, 0.0  ;;  %v325_v36 = vmul.f32 0.01, %v288_v43 }
 0x17c   :  { %v341_v45 = vsel %vm309_vm1, %v288_v43, %v325_v36 }
 0x17d   :  { %v444_v46 = vpack.c.bf16 %v341_v45, %v340_v44 }
 0x17f   :  { %456 = vst [vmem:[#allocation2 + $0x30] sm:$0xff] %v444_v46  }
 0x180   :  { %388 = dma.vmem_to_hbm [thread:$0]  %s381_s13, 1024, %s383_s16, [#allocation3], %s526_s17, %s526_s17, %s527_s18  }
 0x181   :  { %523 = dma.done.wait [#allocation3], 1024  }
 0x182   :  { %524 = vsyncadd [#allocation3], 4294966272 }
 0x183   :  { %393 = vsyncpa [#allocation3], 1 }

</bundles_post_ra>
